<compile_context>
chip_gen: v7x
topology: tpu7x:2x2x1
jax: 0.10.0
libtpu: 0.0.40
codegen_flags: <defaults>
</compile_context>

<pallas_src>
import functools

import jax
import jax.numpy as jnp
from jax.experimental import pallas as pl
from jax.experimental.pallas import tpu as pltpu


def _round_up(x, m):
    return (x + m - 1) // m * m


def composition_kernel(x_ref, cl_ref, cr_ref, w_ref, b_ref, out_ref):
    """Fused composition cell for one batch tile.

    x:   (TB, K)  f32   K = 2*S + T, rows = [h_l | h_r | h_t]
    cl:  (TB, S)  f32
    cr:  (TB, S)  f32
    w:   (K, 5S)  bf16  rows = [w_left ; w_right ; w_track]   (VMEM-resident)
    b:   (1, 5S)  f32                                          (VMEM-resident)
    out: (TB, 2S) f32   = concat([h, c], axis=1)
    """
    S = cl_ref.shape[-1]

    # Single fused MXU pass (K = 2S + T), bf16 operands, f32 accumulation,
    # bias folded in with one add.
    x_bf16 = x_ref[...].astype(jnp.bfloat16)
    lstm_in = jnp.dot(x_bf16, w_ref[...],
                      preferred_element_type=jnp.float32) + b_ref[...]

    g = lstm_in[:, 0 * S:1 * S]
    i = lstm_in[:, 1 * S:2 * S]
    f1 = lstm_in[:, 2 * S:3 * S]
    f2 = lstm_in[:, 3 * S:4 * S]
    o = lstm_in[:, 4 * S:5 * S]

    # Gating stays in f32 (fast path on v5e: no bf16 VPU/EUP).
    c = (jax.nn.sigmoid(f1) * cl_ref[...]
         + jax.nn.sigmoid(f2) * cr_ref[...]
         + jax.nn.sigmoid(i) * jnp.tanh(g))
    h = jax.nn.sigmoid(o) * jnp.tanh(c)

    out_ref[:, 0:S] = h.astype(out_ref.dtype)
    out_ref[:, S:2 * S] = c.astype(out_ref.dtype)


@jax.jit
def composition_forward(h_l, c_l, h_r, c_r, h_t, w_fused, b_fused):
    """Batched composition forward.

    h_l/c_l/h_r/c_r: (B, S) f32, h_t: (B, T) f32
    w_fused: (2S+T, 5S) bf16, b_fused: (1, 5S) f32
    Returns (B, 2S) f32 = concat([h, c], axis=1)  (kept batched; no per-row unbundle).
    """
    B, S = h_l.shape
    K, N5 = w_fused.shape

    # Fused activation matrix for the single K = 2S+T matmul ("bundle" step in JAX).
    x = jnp.concatenate([h_l, h_r, h_t], axis=1)

    # Batch tiling: fill sublanes, shard large batches across the grid.
    TB = min(128, _round_up(B, 8))
    Bp = _round_up(B, TB)
    if Bp != B:
        pad = Bp - B
        x = jnp.pad(x, ((0, pad), (0, 0)))
        c_l = jnp.pad(c_l, ((0, pad), (0, 0)))
        c_r = jnp.pad(c_r, ((0, pad), (0, 0)))

    grid = (Bp // TB,)

    out = pl.pallas_call(
        composition_kernel,
        out_shape=jax.ShapeDtypeStruct((Bp, 2 * S), jnp.float32),
        grid=grid,
        in_specs=[
            pl.BlockSpec((TB, K), lambda t: (t, 0)),   # x tile per grid step
            pl.BlockSpec((TB, S), lambda t: (t, 0)),   # c_l tile
            pl.BlockSpec((TB, S), lambda t: (t, 0)),   # c_r tile
            # Weights / bias: constant block index -> stay VMEM-resident across grid.
            pl.BlockSpec((K, N5), lambda t: (0, 0)),
            pl.BlockSpec((1, N5), lambda t: (0, 0)),
        ],
        out_specs=pl.BlockSpec((TB, 2 * S), lambda t: (t, 0)),
        compiler_params=pltpu.CompilerParams(
            dimension_semantics=("parallel",)),
    )(x, c_l, c_r, w_fused, b_fused)

    return out[:B]


def unbundle(out):
    """API-parity helper mirroring torch.split(cat([h, c], 1), 1, 0).

    Only for callers that truly need a per-node list; keep the batched array in
    performance-sensitive code.
    """
    return jnp.split(out, out.shape[0], axis=0)


def init_params(key, size, tracker_size):
    """Deterministic parameter init matching nn.Linear shapes (stored transposed)."""
    k1, k2, k3, k4 = jax.random.split(key, 4)
    scale = 0.05
    return {
        # nn.Linear(size, 5*size): weight stored as (S, 5S), bias (1, 5S)
        "w_left": scale * jax.random.normal(k1, (size, 5 * size), jnp.float32),
        "b_left": scale * jax.random.normal(k2, (1, 5 * size), jnp.float32),
        # nn.Linear(size, 5*size, bias=False)
        "w_right": scale * jax.random.normal(k3, (size, 5 * size), jnp.float32),
        # nn.Linear(tracker_size, 5*size, bias=False)
        "w_track": scale * jax.random.normal(k4, (tracker_size, 5 * size), jnp.float32),
    }


def fuse_params(params):
    """Pre-stack the three weight matrices into one (2S+T, 5S) bf16 matrix."""
    w = jnp.concatenate(
        [params["w_left"], params["w_right"], params["w_track"]], axis=0
    ).astype(jnp.bfloat16)
    b = params["b_left"].astype(jnp.float32)
    return w, b


def reference_forward(h_l, c_l, h_r, c_r, h_t, params):
    """Pure-JAX reference of the same math (same bf16 matmul precision)."""
    w, b = fuse_params(params)
    x = jnp.concatenate([h_l, h_r, h_t], axis=1).astype(jnp.bfloat16)
    lstm_in = jnp.dot(x, w, preferred_element_type=jnp.float32) + b
    S = h_l.shape[-1]
    g, i, f1, f2, o = [lstm_in[:, k * S:(k + 1) * S] for k in range(5)]
    c = (jax.nn.sigmoid(f1) * c_l + jax.nn.sigmoid(f2) * c_r
         + jax.nn.sigmoid(i) * jnp.tanh(g))
    h = jax.nn.sigmoid(o) * jnp.tanh(c)
    return jnp.concatenate([h, c], axis=1)


if __name__ == "__main__":
    B = 16           # compositions batched per call (fills >= one sublane tile)
    SIZE = 128       # hidden size (multiple of 128 keeps gate splits lane-aligned)
    TRACKER = 64     # tracker hidden size

    key = jax.random.PRNGKey(0)
    kp, kx = jax.random.split(key)
    params = init_params(kp, SIZE, TRACKER)
    w_fused, b_fused = fuse_params(params)

    k1, k2, k3, k4, k5 = jax.random.split(kx, 5)
    h_l = jax.random.normal(k1, (B, SIZE), jnp.float32)
    c_l = jax.random.normal(k2, (B, SIZE), jnp.float32)
    h_r = jax.random.normal(k3, (B, SIZE), jnp.float32)
    c_r = jax.random.normal(k4, (B, SIZE), jnp.float32)
    h_t = jax.random.normal(k5, (B, TRACKER), jnp.float32)

    got = composition_forward(h_l, c_l, h_r, c_r, h_t, w_fused, b_fused)
    got = jax.block_until_ready(got)

    want = reference_forward(h_l, c_l, h_r, c_r, h_t, params)
    assert got.shape == (B, 2 * SIZE)
    assert jnp.allclose(got, want, atol=1e-3, rtol=1e-3), "mismatch vs reference"

    # TODO(synk): the original module returns torch.split(..., 1, 0); the per-row
    # list (see `unbundle`) is intentionally left out of the kernel/hot path.
    print("KERNEL_OK")
</pallas_src>

<mosaic_0001>
module attributes {stable_mosaic.version = 11 : i64} {
  func.func @composition_kernel(%arg0: i32, %arg1: memref<16x320xf32, #tpu.memory_space<vmem>>, %arg2: memref<16x128xf32, #tpu.memory_space<vmem>>, %arg3: memref<16x128xf32, #tpu.memory_space<vmem>>, %arg4: memref<320x640xbf16, #tpu.memory_space<vmem>>, %arg5: memref<1x640xf32, #tpu.memory_space<vmem>>, %arg6: memref<16x256xf32, #tpu.memory_space<vmem>>) attributes {dimension_semantics = [#tpu.dimension_semantics<parallel>], iteration_bounds = array<i64: 1>, scalar_prefetch = 0 : i64, scratch_operands = 0 : i64, tpu.core_type = #tpu.core_type<tc>, window_params = [{transform_indices = @transform_0, window_bounds = array<i64: 16, 320>}, {transform_indices = @transform_1, window_bounds = array<i64: 16, 128>}, {transform_indices = @transform_2, window_bounds = array<i64: 16, 128>}, {pipeline_mode = #tpu.pipeline_mode<synchronous>, transform_indices = @transform_3, window_bounds = array<i64: 320, 640>}, {pipeline_mode = #tpu.pipeline_mode<synchronous>, transform_indices = @transform_4, window_bounds = array<i64: 1, 640>}, {transform_indices = @transform_5, window_bounds = array<i64: 16, 256>}]} {
    %c0 = arith.constant 0 : index
    %c0_0 = arith.constant 0 : index
    %0 = vector.load %arg1[%c0, %c0_0] : memref<16x320xf32, #tpu.memory_space<vmem>>, vector<16x320xf32>
    %1 = arith.truncf %0 : vector<16x320xf32> to vector<16x320xbf16>
    %c0_1 = arith.constant 0 : index
    %c0_2 = arith.constant 0 : index
    %2 = vector.load %arg4[%c0_1, %c0_2] : memref<320x640xbf16, #tpu.memory_space<vmem>>, vector<320x640xbf16>
    %cst = arith.constant dense<0.000000e+00> : vector<16x640xf32>
    %3 = tpu.matmul %1, %2, %cst {dimension_numbers = #tpu.dot_dimension_numbers<[1], [0], [0], [1], [0, 0, 1, 1], [], []>} : vector<16x320xbf16>, vector<320x640xbf16>, vector<16x640xf32> -> vector<16x640xf32>
    %c0_3 = arith.constant 0 : index
    %c0_4 = arith.constant 0 : index
    %4 = vector.load %arg5[%c0_3, %c0_4] : memref<1x640xf32, #tpu.memory_space<vmem>>, vector<1x640xf32>
    %5 = vector.broadcast %4 : vector<1x640xf32> to vector<16x640xf32>
    %6 = arith.addf %3, %5 : vector<16x640xf32>
    %7 = vector.extract_strided_slice %6 {offsets = [0, 0], sizes = [16, 128], strides = [1, 1]} : vector<16x640xf32> to vector<16x128xf32>
    %8 = vector.extract_strided_slice %6 {offsets = [0, 128], sizes = [16, 128], strides = [1, 1]} : vector<16x640xf32> to vector<16x128xf32>
    %9 = vector.extract_strided_slice %6 {offsets = [0, 256], sizes = [16, 128], strides = [1, 1]} : vector<16x640xf32> to vector<16x128xf32>
    %10 = vector.extract_strided_slice %6 {offsets = [0, 384], sizes = [16, 128], strides = [1, 1]} : vector<16x640xf32> to vector<16x128xf32>
    %11 = vector.extract_strided_slice %6 {offsets = [0, 512], sizes = [16, 128], strides = [1, 1]} : vector<16x640xf32> to vector<16x128xf32>
    %12 = arith.negf %9 : vector<16x128xf32>
    %13 = math.exp %12 : vector<16x128xf32>
    %cst_5 = arith.constant 1.000000e+00 : f32
    %14 = vector.broadcast %cst_5 : f32 to vector<16x128xf32>
    %15 = arith.addf %14, %13 : vector<16x128xf32>
    %16 = arith.divf %14, %15 : vector<16x128xf32>
    %c0_6 = arith.constant 0 : index
    %c0_7 = arith.constant 0 : index
    %17 = vector.load %arg2[%c0_6, %c0_7] : memref<16x128xf32, #tpu.memory_space<vmem>>, vector<16x128xf32>
    %18 = arith.mulf %16, %17 : vector<16x128xf32>
    %19 = arith.negf %10 : vector<16x128xf32>
    %20 = math.exp %19 : vector<16x128xf32>
    %cst_8 = arith.constant 1.000000e+00 : f32
    %21 = vector.broadcast %cst_8 : f32 to vector<16x128xf32>
    %22 = arith.addf %21, %20 : vector<16x128xf32>
    %23 = arith.divf %21, %22 : vector<16x128xf32>
    %c0_9 = arith.constant 0 : index
    %c0_10 = arith.constant 0 : index
    %24 = vector.load %arg3[%c0_9, %c0_10] : memref<16x128xf32, #tpu.memory_space<vmem>>, vector<16x128xf32>
    %25 = arith.mulf %23, %24 : vector<16x128xf32>
    %26 = arith.addf %18, %25 : vector<16x128xf32>
    %27 = arith.negf %8 : vector<16x128xf32>
    %28 = math.exp %27 : vector<16x128xf32>
    %cst_11 = arith.constant 1.000000e+00 : f32
    %29 = vector.broadcast %cst_11 : f32 to vector<16x128xf32>
    %30 = arith.addf %29, %28 : vector<16x128xf32>
    %31 = arith.divf %29, %30 : vector<16x128xf32>
    %32 = math.tanh %7 : vector<16x128xf32>
    %33 = arith.mulf %31, %32 : vector<16x128xf32>
    %34 = arith.addf %26, %33 : vector<16x128xf32>
    %35 = arith.negf %11 : vector<16x128xf32>
    %36 = math.exp %35 : vector<16x128xf32>
    %cst_12 = arith.constant 1.000000e+00 : f32
    %37 = vector.broadcast %cst_12 : f32 to vector<16x128xf32>
    %38 = arith.addf %37, %36 : vector<16x128xf32>
    %39 = arith.divf %37, %38 : vector<16x128xf32>
    %40 = math.tanh %34 : vector<16x128xf32>
    %41 = arith.mulf %39, %40 : vector<16x128xf32>
    %c0_13 = arith.constant 0 : index
    %c0_14 = arith.constant 0 : index
    %42 = vector.load %arg6[%c0_13, %c0_14] : memref<16x256xf32, #tpu.memory_space<vmem>>, vector<16x128xf32>
    tpu.vector_store %arg6[%c0_13, %c0_14], %41 {strides = array<i32>} : memref<16x256xf32, #tpu.memory_space<vmem>>, vector<16x128xf32>,
    %c0_15 = arith.constant 0 : index
    %c128 = arith.constant 128 : index
    %43 = vector.load %arg6[%c0_15, %c128] : memref<16x256xf32, #tpu.memory_space<vmem>>, vector<16x128xf32>
    tpu.vector_store %arg6[%c0_15, %c128], %34 {strides = array<i32>} : memref<16x256xf32, #tpu.memory_space<vmem>>, vector<16x128xf32>,
    return
  }
  func.func @transform_0(%arg0: i32) -> (i32, i32) {
    %c0_i32 = arith.constant 0 : i32
    %c0_i32_0 = arith.constant 0 : i32
    return %arg0, %c0_i32 : i32, i32
  }
  func.func @transform_1(%arg0: i32) -> (i32, i32) {
    %c0_i32 = arith.constant 0 : i32
    %c0_i32_0 = arith.constant 0 : i32
    return %arg0, %c0_i32 : i32, i32
  }
  func.func @transform_2(%arg0: i32) -> (i32, i32) {
    %c0_i32 = arith.constant 0 : i32
    %c0_i32_0 = arith.constant 0 : i32
    return %arg0, %c0_i32 : i32, i32
  }
  func.func @transform_3(%arg0: i32) -> (i32, i32) {
    %c0_i32 = arith.constant 0 : i32
    %c0_i32_0 = arith.constant 0 : i32
    %c0_i32_1 = arith.constant 0 : i32
    return %c0_i32, %c0_i32_0 : i32, i32
  }
  func.func @transform_4(%arg0: i32) -> (i32, i32) {
    %c0_i32 = arith.constant 0 : i32
    %c0_i32_0 = arith.constant 0 : i32
    %c0_i32_1 = arith.constant 0 : i32
    return %c0_i32, %c0_i32_0 : i32, i32
  }
  func.func @transform_5(%arg0: i32) -> (i32, i32) {
    %c0_i32 = arith.constant 0 : i32
    %c0_i32_0 = arith.constant 0 : i32
    return %arg0, %c0_i32 : i32, i32
  }
}

</mosaic_0001>

<bundles_post_ra>
// kernel: composition_forward.1
= control target key start
LH: loop header
LB: loop body
LE: loop exit
PB: predicated region body
PF: predicated region fallthrough
CT: control target
= control target key end

     0   :  { %10 = vsyncpa [#allocation3], 0  ;;  %s1585_s0 = inlined_call_operand.vmem [shape: f32[16,320], index: 0, kind: input, shape index: {}]   ;;  %s1586_s1 = inlined_call_operand.vmem [shape: f32[16,128], index: 1, kind: input, shape index: {}]   ;;  %s1587_s2 = inlined_call_operand.vmem [shape: f32[16,128], index: 2, kind: input, shape index: {}]   ;;  %s1588_s3 = inlined_call_operand.hbm [shape: bf16[320,640], index: 3, kind: input, shape index: {}]   ;;  %s1589_s4 = inlined_call_operand.vmem [shape: f32[1,640], index: 4, kind: input, shape index: {}]   ;;  %s1590_s5 = inlined_call_operand.hbm [shape: f32[16,256], index: 5, kind: output, shape index: {}]  }
   0x1   :  { %11 = vsyncpa [#allocation4], 0  ;;  %s1462_s18 = smov [#allocation2]   ;;  %s1414_s22 = scalar_lea.hbm %s1588_s3, 12800 }
   0x2   :  { %s23_s19 = sshll.u32 %s1462_s18, 4  ;;  %p1415_p0 = scmp.ne.s32.totalorder %s1588_s3, %s1414_s22  ;;  %s24_s19 = int_to_ptr.vmem [resolvable:$true] %s23_s19 }
   0x3   :  { %p1418_p1 = scmp.lt.u32.totalorder %s1414_s22, %s1588_s3 }
   0x5   :  { %p1420_p2 = pnand %p1418_p1, %p1415_p0 }
   0x7   :  { %1423 = shalt.err (!%p1420_p2)
}
   0x8   :  { %s1424_s27 = scalar_lea.vmem %s24_s19, 12800  ;;  %p1429_p4 = scmp.lt.s32.totalorder %s24_s19, %s24_s19 }
   0x9   :  { %p1425_p3 = scmp.ne.s32.totalorder %s24_s19, %s1424_s27  ;;  %p1430_p5 = scmp.lt.s32.totalorder %s1424_s27, %s1424_s27 }
   0xb   :  { %p1431_p6 = por %p1430_p5, %p1429_p4 }
   0xd   :  { %p1432_p7 = pnand %p1431_p6, %p1425_p3 }
   0xf   :  { %1435 = shalt.err (!%p1432_p7)
}
  0x10   :  { %s1463_s28 = smov 320   ;;  %s1464_s29 = smov 20  }
  0x11   :  { %29 = dma.hbm_to_vmem [thread:$0]  %s1588_s3, 12800, %s24_s19, [#allocation3], %s1463_s28, %s1463_s28, %s1464_s29  }
  0x12   :  { %1458 = dma.done.wait [#allocation3], 12800  }
  0x13   :  { %1459 = vsyncadd [#allocation3], 4294954496  ;;  %v1234_v0 = vld [vmem:[#allocation2 + $0x4] ss:$20 sps:$4 sm:$0xff]   ;;  %v1236_v1 = vld [vmem:[#allocation2 + $0xc] ss:$20 sps:$4 sm:$0xff]  }
  0x14   :  { %716 = vmatprep.subr.bf16.mxu0 %v1234_v0  ;;  %v1238_v2 = vld [vmem:[#allocation2] ss:$20 sps:$4 sm:$0xff]   ;;  %v1239_v3 = vld [vmem:[#allocation2 + $0x8] ss:$20 sps:$4 sm:$0xff]   ;;  %802 = vmatprep.subr.bf16.mxu1 %v1236_v1  ;;  %v1245_v7 = vld [vmem:[#allocation2 + $0x30] ss:$20 sps:$4 sm:$0xff]  }
  0x15   :  { %v1240_v4 = vld [vmem:[#allocation2 + $0x2c] ss:$20 sps:$4 sm:$0xff]   ;;  %717 = vmatpush1.bf16.msra.mxu0 %v1238_v2  ;;  %803 = vmatpush1.bf16.msra.mxu1 %v1239_v3  ;;  %v1242_v5 = vld [vmem:[#allocation2 + $0x34] ss:$20 sps:$4 sm:$0xff]   ;;  %v1248_v9 = vld [vmem:[#allocation2 + $0x5c] ss:$20 sps:$4 sm:$0xff]  }
  0x16   :  { %v1244_v6 = vld [vmem:[#allocation2 + $0x28] ss:$20 sps:$4 sm:$0xff]   ;;  %718 = vmatprep.subr.bf16.mxu0 %v1240_v4  ;;  %804 = vmatprep.subr.bf16.mxu1 %v1242_v5  ;;  %v1250_v10 = vld [vmem:[#allocation2 + $0x50] ss:$20 sps:$4 sm:$0xff]   ;;  %v1251_v11 = vld [vmem:[#allocation2 + $0x58] ss:$20 sps:$4 sm:$0xff]  }
  0x17   :  { %v1246_v8 = vld [vmem:[#allocation2 + $0x54] ss:$20 sps:$4 sm:$0xff]   ;;  %v1252_v12 = vld [vmem:[#allocation2 + $0x7c] ss:$20 sps:$4 sm:$0xff]   ;;  %v1254_v13 = vld [vmem:[#allocation2 + $0x84] ss:$20 sps:$4 sm:$0xff]  }
  0x18   :  { %v1256_v14 = vld [vmem:[#allocation2 + $0x78] ss:$20 sps:$4 sm:$0xff]   ;;  %v1257_v15 = vld [vmem:[#allocation2 + $0x80] ss:$20 sps:$4 sm:$0xff]   ;;  %v1263_v19 = vld [vmem:[#allocation2 + $0xa8] ss:$20 sps:$4 sm:$0xff]  }
  0x19   :  { %719 = vmatpush1.bf16.msra.mxu0 %v1244_v6  ;;  %805 = vmatpush1.bf16.msra.mxu1 %v1245_v7  ;;  %v1258_v16 = vld [vmem:[#allocation2 + $0xa4] ss:$20 sps:$4 sm:$0xff]   ;;  %v1260_v17 = vld [vmem:[#allocation2 + $0xac] ss:$20 sps:$4 sm:$0xff]   ;;  %v1266_v21 = vld [vmem:[#allocation2 + $0xd4] ss:$20 sps:$4 sm:$0xff]  }
  0x1a   :  { %720 = vmatprep.subr.bf16.mxu0 %v1246_v8  ;;  %806 = vmatprep.subr.bf16.mxu1 %v1248_v9  ;;  %v1262_v18 = vld [vmem:[#allocation2 + $0xa0] ss:$20 sps:$4 sm:$0xff]   ;;  %v1268_v22 = vld [vmem:[#allocation2 + $0xc8] ss:$20 sps:$4 sm:$0xff]   ;;  %v1269_v23 = vld [vmem:[#allocation2 + $0xd0] ss:$20 sps:$4 sm:$0xff]  }
  0x1b   :  { %v1264_v20 = vld [vmem:[#allocation2 + $0xcc] ss:$20 sps:$4 sm:$0xff]   ;;  %v1270_v24 = vld [vmem:[#allocation2 + $0xf4] ss:$20 sps:$4 sm:$0xff]   ;;  %v1272_v25 = vld [vmem:[#allocation2 + $0xfc] ss:$20 sps:$4 sm:$0xff]  }
  0x1c   :  { %v1274_v26 = vld [vmem:[#allocation2 + $0xf0] ss:$20 sps:$4 sm:$0xff]   ;;  %v1275_v27 = vld [vmem:[#allocation2 + $0xf8] ss:$20 sps:$4 sm:$0xff]   ;;  %v1281_v31 = vld [vmem:[#allocation2 + $0x120] ss:$20 sps:$4 sm:$0xff]  }
  0x1d   :  { %721 = vmatpush1.bf16.msra.mxu0 %v1250_v10  ;;  %807 = vmatpush1.bf16.msra.mxu1 %v1251_v11  ;;  %v1276_v28 = vld [vmem:[#allocation2 + $0x11c] ss:$20 sps:$4 sm:$0xff]   ;;  %v1278_v29 = vld [vmem:[#allocation2 + $0x124] ss:$20 sps:$4 sm:$0xff]   ;;  %v1284_v33 = vld [vmem:[#allocation2 + $0x14c] ss:$20 sps:$4 sm:$0xff]  }
  0x1e   :  { %722 = vmatprep.subr.bf16.mxu0 %v1252_v12  ;;  %808 = vmatprep.subr.bf16.mxu1 %v1254_v13  ;;  %v1280_v30 = vld [vmem:[#allocation2 + $0x118] ss:$20 sps:$4 sm:$0xff]   ;;  %v1286_v34 = vld [vmem:[#allocation2 + $0x140] ss:$20 sps:$4 sm:$0xff]   ;;  %v1287_v35 = vld [vmem:[#allocation2 + $0x148] ss:$20 sps:$4 sm:$0xff]  }
  0x1f   :  { %v1282_v32 = vld [vmem:[#allocation2 + $0x144] ss:$20 sps:$4 sm:$0xff]   ;;  %v1288_v36 = vld [vmem:[#allocation2 + $0x16c] ss:$20 sps:$4 sm:$0xff]   ;;  %v1290_v37 = vld [vmem:[#allocation2 + $0x174] ss:$20 sps:$4 sm:$0xff]  }
  0x20   :  { %v1292_v38 = vld [vmem:[#allocation2 + $0x168] ss:$20 sps:$4 sm:$0xff]   ;;  %v1293_v39 = vld [vmem:[#allocation2 + $0x170] ss:$20 sps:$4 sm:$0xff]   ;;  %v1299_v43 = vld [vmem:[#allocation2 + $0x198] ss:$20 sps:$4 sm:$0xff]  }
  0x21   :  { %723 = vmatpush1.bf16.msra.mxu0 %v1256_v14  ;;  %809 = vmatpush1.bf16.msra.mxu1 %v1257_v15  ;;  %v1294_v40 = vld [vmem:[#allocation2 + $0x194] ss:$20 sps:$4 sm:$0xff]   ;;  %v1296_v41 = vld [vmem:[#allocation2 + $0x19c] ss:$20 sps:$4 sm:$0xff]   ;;  %v1302_v45 = vld [vmem:[#allocation2 + $0x1c4] ss:$20 sps:$4 sm:$0xff]  }
  0x22   :  { %724 = vmatprep.subr.bf16.mxu0 %v1258_v16  ;;  %810 = vmatprep.subr.bf16.mxu1 %v1260_v17  ;;  %v1298_v42 = vld [vmem:[#allocation2 + $0x190] ss:$20 sps:$4 sm:$0xff]   ;;  %v37_v46 = vld [vmem:[%s1585_s0 + $0x8] sm:$0xff]  ;;  %v1305_v49 = vld [vmem:[#allocation2 + $0x1c0] ss:$20 sps:$4 sm:$0xff]   ;;  %v1465_v17 = vmov 0  }
  0x23   :  { %v1300_v44 = vld [vmem:[#allocation2 + $0x1bc] ss:$20 sps:$4 sm:$0xff]   ;;  %v40_v47 = vld [vmem:[%s1585_s0 + $0x20] sm:$0xff]  ;;  %v1304_v48 = vld [vmem:[#allocation2 + $0x1b8] ss:$20 sps:$4 sm:$0xff]   ;;  %vm712_vm0 = vcmask 523264  }
  0x24   :  { %v1519_v50 = vpack.c.bf16 %v40_v47, %v37_v46  ;;  %v1306_v51 = vld [vmem:[#allocation2 + $0x1e4] ss:$20 sps:$4 sm:$0xff]   ;;  %v1308_v52 = vld [vmem:[#allocation2 + $0x1ec] ss:$20 sps:$4 sm:$0xff]   ;;  %v1311_v54 = vld [vmem:[#allocation2 + $0x1e8] ss:$20 sps:$4 sm:$0xff]   ;;  %v167_v47 = vlaneseq }
  0x25   :  { %725 = vmatpush1.bf16.msra.mxu0 %v1262_v18  ;;  %811 = vmatpush1.bf16.msra.mxu1 %v1263_v19  ;;  %v1310_v53 = vld [vmem:[#allocation2 + $0x1e0] ss:$20 sps:$4 sm:$0xff]   ;;  %v1316_v57 = vld [vmem:[#allocation2 + $0x208] ss:$20 sps:$4 sm:$0xff]   ;;  %v1317_v58 = vld [vmem:[#allocation2 + $0x210] ss:$20 sps:$4 sm:$0xff]  }
  0x26   :  { %726 = vmatprep.subr.bf16.mxu0 %v1264_v20  ;;  %812 = vmatprep.subr.bf16.mxu1 %v1266_v21  ;;  %v1312_v55 = vld [vmem:[#allocation2 + $0x20c] ss:$20 sps:$4 sm:$0xff]   ;;  %v1314_v56 = vld [vmem:[#allocation2 + $0x214] ss:$20 sps:$4 sm:$0xff]   ;;  %v1320_v60 = vld [vmem:[#allocation2 + $0x23c] ss:$20 sps:$4 sm:$0xff]  }
  0x27   :  { %748 = vmatprep.mubr.bf16.mxu0 %v1519_v50  ;;  %834 = vmatprep.mubr.bf16.mxu1 %v1519_v50  ;;  %v1318_v59 = vld [vmem:[#allocation2 + $0x234] ss:$20 sps:$4 sm:$0xff]   ;;  %v1322_v61 = vld [vmem:[#allocation2 + $0x230] ss:$20 sps:$4 sm:$0xff]   ;;  %v1323_v62 = vld [vmem:[#allocation2 + $0x238] ss:$20 sps:$4 sm:$0xff]  }
  0x28   :  { %v1324_v63 = vld [vmem:[#allocation2 + $0x25c] ss:$20 sps:$4 sm:$0xff]   ;;  %v1326_v0 = vld [vmem:[#allocation2 + $0x264] ss:$20 sps:$4 sm:$0xff]   ;;  %v1329_v2 = vld [vmem:[#allocation2 + $0x260] ss:$20 sps:$4 sm:$0xff]  }
  0x29   :  { %727 = vmatpush1.bf16.msra.mxu0 %v1268_v22  ;;  %813 = vmatpush1.bf16.msra.mxu1 %v1269_v23  ;;  %v1328_v1 = vld [vmem:[#allocation2 + $0x258] ss:$20 sps:$4 sm:$0xff]   ;;  %v36_v4 = vld [vmem:[%s1585_s0] sm:$0xff]  ;;  %v1333_v8 = vld [vmem:[#allocation2 + $0x288] ss:$20 sps:$4 sm:$0xff]   ;;  %vm1467_vm1 = vmmov 0  }
  0x2a   :  { %728 = vmatprep.subr.bf16.mxu0 %v1270_v24  ;;  %814 = vmatprep.subr.bf16.mxu1 %v1272_v25  ;;  %v1332_v3 = vld [vmem:[#allocation2 + $0x284] ss:$20 sps:$4 sm:$0xff]   ;;  %v1335_v6 = vld [vmem:[#allocation2 + $0x28c] ss:$20 sps:$4 sm:$0xff]   ;;  %v1341_v11 = vld [vmem:[#allocation2 + $0x2b4] ss:$20 sps:$4 sm:$0xff]  }
  0x2b   :  { %v39_v5 = vld [vmem:[%s1585_s0 + $0x18] sm:$0xff]  ;;  %v1330_v7 = vld [vmem:[#allocation2 + $0x280] ss:$20 sps:$4 sm:$0xff]   ;;  %v1339_v13 = vld [vmem:[#allocation2 + $0x2b0] ss:$20 sps:$4 sm:$0xff]  }
  0x2c   :  { %v1529_v9 = vpack.c.bf16 %v39_v5, %v36_v4  ;;  %v1338_v10 = vld [vmem:[#allocation2 + $0x2ac] ss:$20 sps:$4 sm:$0xff]   ;;  %v1336_v12 = vld [vmem:[#allocation2 + $0x2a8] ss:$20 sps:$4 sm:$0xff]   ;;  %v1342_v16 = vld [vmem:[#allocation2 + $0x2d0] ss:$20 sps:$4 sm:$0xff]  }
  0x2d   :  { %729 = vmatpush1.bf16.msra.mxu0 %v1274_v26  ;;  %815 = vmatpush1.bf16.msra.mxu1 %v1275_v27  ;;  %v1344_v14 = vld [vmem:[#allocation2 + $0x2d4] ss:$20 sps:$4 sm:$0xff]   ;;  %v1347_v15 = vld [vmem:[#allocation2 + $0x2dc] ss:$20 sps:$4 sm:$0xff]   ;;  %v1345_v18 = vld [vmem:[#allocation2 + $0x2d8] ss:$20 sps:$4 sm:$0xff]  }
  0x2e   :  { %730 = vmatprep.subr.bf16.mxu0 %v1276_v28  ;;  %816 = vmatprep.subr.bf16.mxu1 %v1278_v29  ;;  %v1350_v19 = vld [vmem:[#allocation2 + $0x2fc] ss:$20 sps:$4 sm:$0xff]   ;;  %v1353_v20 = vld [vmem:[#allocation2 + $0x304] ss:$20 sps:$4 sm:$0xff]   ;;  %v1351_v22 = vld [vmem:[#allocation2 + $0x300] ss:$20 sps:$4 sm:$0xff]  }
  0x2f   :  { %v1348_v21 = vld [vmem:[#allocation2 + $0x2f8] ss:$20 sps:$4 sm:$0xff]   ;;  %v38_v23 = vld [vmem:[%s1585_s0 + $0x10] sm:$0xff]  ;;  %v1372_v46 = vld [vmem:[#allocation2 + $0x128] ss:$20 sps:$4 sm:$0xff]  }
  0x30   :  { %v41_v24 = vld [vmem:[%s1585_s0 + $0x28] sm:$0xff]  ;;  %v1354_v25 = vld [vmem:[#allocation2 + $0x150] ss:$20 sps:$4 sm:$0xff]  }
  0x31   :  { %731 = vmatpush1.bf16.msra.mxu0 %v1280_v30  ;;  %817 = vmatpush1.bf16.msra.mxu1 %v1281_v31  ;;  %v44_v26 = vpack.c.bf16 %v41_v24, %v38_v23  ;;  %v1355_v27 = vld [vmem:[#allocation2 + $0x10] ss:$20 sps:$4 sm:$0xff]   ;;  %v1356_v29 = vld [vmem:[#allocation2 + $0x178] ss:$20 sps:$4 sm:$0xff]   ;;  %v1466_v30 = vmov 0.0  }
  0x32   :  { %732 = vmatprep.subr.bf16.mxu0 %v1282_v32  ;;  %818 = vmatprep.subr.bf16.mxu1 %v1284_v33  ;;  %v1364_v28 = vld [vmem:[#allocation2 + $0x290] ss:$20 sps:$4 sm:$0xff]   ;;  %v1357_v31 = vld [vmem:[#allocation2 + $0x38] ss:$20 sps:$4 sm:$0xff]   ;;  %v1358_v33 = vld [vmem:[#allocation2 + $0x1a0] ss:$20 sps:$4 sm:$0xff]  }
  0x33   :  { %v1367_v32 = vld [vmem:[#allocation2 + $0x2b8] ss:$20 sps:$4 sm:$0xff]  }
  0x35   :  { %733 = vmatpush1.bf16.msra.mxu0 %v1286_v34  ;;  %819 = vmatpush1.bf16.msra.mxu1 %v1287_v35  ;;  %v1359_v34 = vld [vmem:[#allocation2 + $0x60] ss:$20 sps:$4 sm:$0xff]  }
  0x36   :  { %734 = vmatprep.subr.bf16.mxu0 %v1288_v36  ;;  %820 = vmatprep.subr.bf16.mxu1 %v1290_v37  ;;  %v1370_v35 = vld [vmem:[#allocation2 + $0x2e0] ss:$20 sps:$4 sm:$0xff]   ;;  %v1360_v36 = vld [vmem:[#allocation2 + $0x1c8] ss:$20 sps:$4 sm:$0xff]  }
  0x37   :  { %v1361_v37 = vld [vmem:[#allocation2 + $0x88] ss:$20 sps:$4 sm:$0xff]  }
  0x39   :  { %735 = vmatpush1.bf16.msra.mxu0 %v1292_v38  ;;  %821 = vmatpush1.bf16.msra.mxu1 %v1293_v39  ;;  %v1373_v38 = vld [vmem:[#allocation2 + $0x308] ss:$20 sps:$4 sm:$0xff]   ;;  %v1362_v39 = vld [vmem:[#allocation2 + $0x1f0] ss:$20 sps:$4 sm:$0xff]  }
  0x3a   :  { %736 = vmatprep.subr.bf16.mxu0 %v1294_v40  ;;  %822 = vmatprep.subr.bf16.mxu1 %v1296_v41  ;;  %v1363_v40 = vld [vmem:[#allocation2 + $0xb0] ss:$20 sps:$4 sm:$0xff]   ;;  %v1365_v41 = vld [vmem:[#allocation2 + $0x218] ss:$20 sps:$4 sm:$0xff]  }
  0x3d   :  { %737 = vmatpush1.bf16.msra.mxu0 %v1298_v42  ;;  %823 = vmatpush1.bf16.msra.mxu1 %v1299_v43  ;;  %v1366_v42 = vld [vmem:[#allocation2 + $0xd8] ss:$20 sps:$4 sm:$0xff]   ;;  %v1368_v43 = vld [vmem:[#allocation2 + $0x240] ss:$20 sps:$4 sm:$0xff]  }
  0x3e   :  { %738 = vmatprep.subr.bf16.mxu0 %v1300_v44  ;;  %824 = vmatprep.subr.bf16.mxu1 %v1302_v45  ;;  %v1369_v44 = vld [vmem:[#allocation2 + $0x100] ss:$20 sps:$4 sm:$0xff]   ;;  %v1371_v45 = vld [vmem:[#allocation2 + $0x268] ss:$20 sps:$4 sm:$0xff]  }
  0x41   :  { %739 = vmatpush1.bf16.msra.mxu0 %v1304_v48  ;;  %825 = vmatpush1.bf16.msra.mxu1 %v1305_v49  ;;  %v1544_v48 = vshrl.u32 %v167_v47, 7 }
  0x42   :  { %740 = vmatprep.subr.bf16.mxu0 %v1306_v51  ;;  %826 = vmatprep.subr.bf16.mxu1 %v1308_v52 }
  0x43   :  { %v177_v49 = vsub.s32 2, %v1544_v48  ;;  %v173_v51 = vsub.s32 1, %v1544_v48  ;;  %v181_v52 = vsub.s32 3, %v1544_v48 }
  0x45   :  { %741 = vmatpush1.bf16.msra.mxu0 %v1310_v53  ;;  %827 = vmatpush1.bf16.msra.mxu1 %v1311_v54 }
  0x46   :  { %742 = vmatprep.subr.bf16.mxu0 %v1312_v55  ;;  %828 = vmatprep.subr.bf16.mxu1 %v1314_v56 }
  0x49   :  { %743 = vmatpush1.bf16.msra.mxu0 %v1316_v57  ;;  %829 = vmatpush1.bf16.msra.mxu1 %v1317_v58 }
  0x4a   :  { %744 = vmatprep.subr.bf16.mxu0 %v1318_v59  ;;  %830 = vmatprep.subr.bf16.mxu1 %v1320_v60 }
  0x4d   :  { %745 = vmatpush1.bf16.msra.mxu0 %v1322_v61  ;;  %831 = vmatpush1.bf16.msra.mxu1 %v1323_v62 }
  0x4e   :  { %746 = vmatprep.subr.bf16.mxu0 %v1324_v63  ;;  %832 = vmatprep.subr.bf16.mxu1 %v1326_v0 }
  0x51   :  { %747 = vmatpush1.bf16.msra.mxu0 %v1328_v1  ;;  %833 = vmatpush1.bf16.msra.mxu1 %v1329_v2 }
  0x52   :  { %759 = vmatprep.subr.bf16.mxu0 %v1332_v3  ;;  %845 = vmatprep.subr.bf16.mxu1 %v1335_v6 }
  0x54   :  { %749 = vmatmul.mubr.bf16.vlgmr.msra.gmra.mrb[0].mxu0 %v1529_v9  ;;  %835 = vmatmul.mubr.bf16.vlgmr.msra.gmra.mrb[0].mxu1 %v1529_v9 }
  0x55   :  { %760 = vmatpush1.bf16.msra.mxu0 %v1330_v7  ;;  %846 = vmatpush1.bf16.msra.mxu1 %v1333_v8 }
  0x56   :  { %761 = vmatprep.subr.bf16.mxu0 %v1338_v10  ;;  %847 = vmatprep.subr.bf16.mxu1 %v1341_v11 }
  0x57   :  { %791 = vmatprep.mubr.bf16.mxu0 %v1465_v17  ;;  %877 = vmatprep.mubr.bf16.mxu1 %v1465_v17 }
  0x59   :  { %762 = vmatpush1.bf16.msra.mxu0 %v1336_v12  ;;  %848 = vmatpush1.bf16.msra.mxu1 %v1339_v13 }
  0x5a   :  { %763 = vmatprep.subr.bf16.mxu0 %v1344_v14  ;;  %849 = vmatprep.subr.bf16.mxu1 %v1347_v15 }
  0x5d   :  { %764 = vmatpush1.bf16.msra.mxu0 %v1342_v16  ;;  %850 = vmatpush1.bf16.msra.mxu1 %v1345_v18 }
  0x5e   :  { %765 = vmatprep.subr.bf16.mxu0 %v1350_v19  ;;  %851 = vmatprep.subr.bf16.mxu1 %v1353_v20 }
  0x61   :  { %766 = vmatpush1.bf16.msra.mxu0 %v1348_v21  ;;  %852 = vmatpush1.bf16.msra.mxu1 %v1351_v22 }
  0x62   :  { %1170 = vmatprep.subr.bf16.mxu0 %v1354_v25  ;;  %1197 = vmatprep.subr.bf16.mxu1 %v1466_v30 }
  0x64   :  { %1159 = vmatmul.mubr.msk.bf16.vlgmr.msra.gmra.mrb[0].mxu0 %vm712_vm0, %v44_v26  ;;  %1160 = vmatmul.mubr.msk.bf16.vlgmr.msra.gmra.mrb[0].mxu1 %vm712_vm0, %v44_v26 }
  0x65   :  { %1171 = vmatpush3.bf16.msra.mxu0 %v1355_v27  ;;  %1198 = vmatpush3.bf16.msra.mxu1 %v1364_v28 }
  0x66   :  { %1172 = vmatprep.subr.bf16.mxu0 %v1356_v29  ;;  %1199 = vmatprep.subr.bf16.mxu1 %v1466_v30 }
  0x67   :  { %920 = vmatprep.mubr.bf16.mxu0 %v1519_v50  ;;  %1205 = vmatprep.mubr.msk.bf16.mxu1 %vm1467_vm1, %v1466_v30  ;;  %v1550_v50 = vld [vmem:[%s1589_s4] sm:$0x1f] }
  0x68   :  { %v178_v53 = vrot.slane %v1550_v50, %v177_v49  ;;  %v174_v54 = vrot.slane %v1550_v50, %v173_v51  ;;  %v182_v55 = vrot.slane %v1550_v50, %v181_v52 }
  0x69   :  { %1173 = vmatpush3.bf16.msra.mxu0 %v1357_v31  ;;  %1200 = vmatpush3.bf16.msra.mxu1 %v1367_v32  ;;  %v982_v32 = vld [vmem:[%s1586_s1] sm:$0xff] }
  0x6a   :  { %1174 = vmatprep.subr.bf16.mxu0 %v1358_v33  ;;  %1201 = vmatprep.subr.bf16.mxu1 %v1466_v30 }
  0x6d   :  { %1175 = vmatpush3.bf16.msra.mxu0 %v1359_v34  ;;  %1202 = vmatpush3.bf16.msra.mxu1 %v1370_v35  ;;  %v998_v35 = vld [vmem:[%s1587_s2] sm:$0xff] }
  0x6e   :  { %1176 = vmatprep.subr.bf16.mxu0 %v1360_v36  ;;  %1203 = vmatprep.subr.bf16.mxu1 %v1466_v30  ;;  %v185_v36 = vsub.s32 4, %v1544_v48 }
  0x70   :  { %v186_v47 = vrot.slane %v1550_v50, %v185_v36 }
  0x71   :  { %1177 = vmatpush3.bf16.msra.mxu0 %v1361_v37  ;;  %1204 = vmatpush3.bf16.msra.mxu1 %v1373_v38 }
  0x72   :  { %1178 = vmatprep.subr.bf16.mxu0 %v1362_v39 }
  0x74   :  { %1206 = vmatmul.mubr.msk.bf16.vlgmr.msra.gmra.mrb[4].mxu1 %vm712_vm0, %v44_v26 }
  0x75   :  { %1179 = vmatpush3.bf16.msra.mxu0 %v1363_v40 }
  0x76   :  { %1180 = vmatprep.subr.bf16.mxu0 %v1365_v41  ;;  %v983_v41 = vld [vmem:[%s1586_s1 + $0x8] sm:$0xff]  ;;  %s1468_s1 = smov [#allocation5]  }
  0x79   :  { %1181 = vmatpush3.bf16.msra.mxu0 %v1366_v42 }
  0x7a   :  { %1182 = vmatprep.subr.bf16.mxu0 %v1368_v43 }
  0x7d   :  { %1183 = vmatpush3.bf16.msra.mxu0 %v1369_v44 }
  0x7e   :  { %1184 = vmatprep.subr.bf16.mxu0 %v1371_v45  ;;  %v999_v45 = vld [vmem:[%s1587_s2 + $0x8] sm:$0xff]  ;;  %s1047_s2 = sshll.u32 %s1468_s1, 4  ;;  %s1048_s2 = int_to_ptr.vmem [resolvable:$true] %s1047_s2 }
  0x7f   :  { %s1436_s26 = scalar_lea.vmem %s1048_s2, 512  ;;  %p1441_p9 = scmp.lt.s32.totalorder %s1048_s2, %s1048_s2 }
  0x80   :  { %p1437_p8 = scmp.ne.s32.totalorder %s1048_s2, %s1436_s26  ;;  %p1442_p10 = scmp.lt.s32.totalorder %s1436_s26, %s1436_s26 }
  0x81   :  { %1185 = vmatpush3.bf16.msra.mxu0 %v1372_v46 }
  0x82   :  { %p1443_p11 = por %p1442_p10, %p1441_p9 }
  0x84   :  { %921 = vmatmul.mubr.bf16.vlgmr.msra.gmra.mrb[4].mxu0 %v1529_v9  ;;  %v169_v9 = vsub.s32 0, %v1544_v48  ;;  %p1444_p12 = pnand %p1443_p11, %p1437_p8 }
  0x86   :  { %v170_v13 = vrot.slane %v1550_v50, %v169_v9 }
 0x137   :  { %v793_v56 = vpop.f32.mrb[0].mxu0  ;;  %v879_v57 = vpop.f32.mrb[0].mxu1 }
 0x138   :  { %v1213_v58 = vadd.f32 %v879_v57, %v178_v53  ;;  %v795_v59 = vpop.f32.mrb[1].mxu0  ;;  %v881_v60 = vpop.f32.mrb[1].mxu1  ;;  %v1209_v14 = vadd.f32 %v793_v56, %v170_v13 }
 0x139   :  { %v1210_v61 = vadd.f32 %v795_v59, %v174_v54  ;;  %v1214_v62 = vadd.f32 %v881_v60, %v182_v55  ;;  %v797_v63 = vpop.f32.mrb[2].mxu0  ;;  %v883_v0 = vpop.f32.mrb[2].mxu1 }
 0x13a   :  { %v1162_v1 = vmul.f32 -1.442695, %v1213_v58  ;;  %v1215_v2 = vadd.f32 %v883_v0, %v178_v53  ;;  %v799_v3 = vpop.f32.mrb[3].mxu0  ;;  %v885_v4 = vpop.f32.mrb[3].mxu1  ;;  %v1211_v21 = vadd.f32 %v797_v63, %v170_v13 }
 0x13b   :  { %v1166_v5 = vmul.f32 -1.442695, %v1210_v61  ;;  %v1164_v6 = vmul.f32 -1.442695, %v1214_v62  ;;  %v1212_v7 = vadd.f32 %v799_v3, %v174_v54  ;;  %v1216_v8 = vadd.f32 %v885_v4, %v182_v55 }
 0x13c   :  { %1374 = vpow2.f32 %v1162_v1  ;;  %v1163_v10 = vmul.f32 -1.442695, %v1215_v2 }
 0x13d   :  { %1376 = vpow2.f32 %v1166_v5  ;;  %v1167_v11 = vmul.f32 -1.442695, %v1212_v7  ;;  %v1165_v12 = vmul.f32 -1.442695, %v1216_v8 }
 0x13e   :  { %1378 = vpow2.f32 %v1164_v6 }
 0x13f   :  { %1380 = vpow2.f32 %v1163_v10 }
 0x140   :  { %1382 = vpow2.f32 %v1167_v11 }
 0x141   :  { %1384 = vpow2.f32 %v1165_v12 }
 0x142   :  { %1386 = vtanh.f32 %v1209_v14 }
 0x146   :  { %v1375_v15 = vpop.eup %1374 }
 0x147   :  { %v1377_v16 = vpop.eup %1376  ;;  %v976_v17 = vadd.f32 1.0, %v1375_v15  ;;  %v963_v18 = vpop.f32.mrb[4].mxu1 }
 0x148   :  { %v1379_v19 = vpop.eup %1378  ;;  %v1010_v20 = vadd.f32 1.0, %v1377_v16  ;;  %v1207_v22 = vpop.f32.mrb[5].mxu1 }
 0x149   :  { %1388 = vrcp.f32 %v976_v17  ;;  %v992_v23 = vadd.f32 1.0, %v1379_v19  ;;  %v966_v24 = vpop.f32.mrb[6].mxu1  ;;  %v1381_v25 = vpop.eup %1380 }
 0x14a   :  { %1390 = vrcp.f32 %v1010_v20  ;;  %v1208_v26 = vpop.f32.mrb[7].mxu1  ;;  %v1383_v27 = vpop.eup %1382  ;;  %v977_v28 = vadd.f32 1.0, %v1381_v25 }
 0x14b   :  { %1392 = vrcp.f32 %v992_v23  ;;  %v1385_v29 = vpop.eup %1384  ;;  %v1011_v30 = vadd.f32 1.0, %v1383_v27 }
 0x14c   :  { %1394 = vtanh.f32 %v1211_v21  ;;  %v993_v31 = vadd.f32 1.0, %v1385_v29  ;;  %v1387_v33 = vpop.eup %1386 }
 0x14d   :  { %1396 = vrcp.f32 %v977_v28 }
 0x14e   :  { %1398 = vrcp.f32 %v1011_v30 }
 0x14f   :  { %1400 = vrcp.f32 %v993_v31 }
 0x153   :  { %v1389_v34 = vpop.eup %1388 }
 0x154   :  { %v1391_v37 = vpop.eup %1390  ;;  %v984_v38 = vmul.f32 %v1389_v34, %v982_v32 }
 0x155   :  { %v1393_v39 = vpop.eup %1392  ;;  %v1018_v40 = vmul.f32 %v1391_v37, %v1387_v33 }
 0x156   :  { %v1395_v42 = vpop.eup %1394  ;;  %v1000_v43 = vmul.f32 %v1393_v39, %v998_v35 }
 0x157   :  { %v1397_v44 = vpop.eup %1396  ;;  %v1186_v46 = vpop.f32.mrb[4].mxu0 }
 0x158   :  { %v1399_v49 = vpop.eup %1398  ;;  %v1002_v48 = vadd.f32 %v1000_v43, %v984_v38  ;;  %v985_v51 = vmul.f32 %v1397_v44, %v983_v41  ;;  %v1187_v52 = vpop.f32.mrb[5].mxu0 }
 0x159   :  { %v1401_v53 = vpop.eup %1400  ;;  %v1019_v54 = vmul.f32 %v1399_v49, %v1395_v42  ;;  %v1188_v55 = vadd.f32 %v1187_v52, %v1186_v46  ;;  %v1189_v56 = vpop.f32.mrb[6].mxu0 }
 0x15a   :  { %v1020_v57 = vadd.f32 %v1018_v40, %v1002_v48  ;;  %v1001_v58 = vmul.f32 %v1401_v53, %v999_v45  ;;  %v1190_v59 = vpop.f32.mrb[7].mxu0 }
 0x15b   :  { %v923_v60 = vadd.f32 %v1188_v55, %v186_v47  ;;  %v1191_v61 = vadd.f32 %v1190_v59, %v1189_v56 }
 0x15c   :  { %1040 = vst [vmem:[#allocation5 + $0x8] sm:$0xff] %v1020_v57  ;;  %v1003_v62 = vadd.f32 %v1001_v58, %v985_v51 }
 0x15d   :  { %v964_v63 = vadd.f32 %v963_v18, %v923_v60  ;;  %v926_v0 = vadd.f32 %v1191_v61, %v186_v47 }
 0x15e   :  { %v1021_v1 = vadd.f32 %v1019_v54, %v1003_v62 }
 0x15f   :  { %v1168_v2 = vmul.f32 -1.442695, %v964_v63  ;;  %v967_v50 = vadd.f32 %v966_v24, %v926_v0 }
 0x160   :  { %1041 = vst [vmem:[#allocation5 + $0x18] sm:$0xff] %v1021_v1 }
 0x161   :  { %1402 = vpow2.f32 %v1168_v2  ;;  %v1169_v3 = vmul.f32 -1.442695, %v967_v50 }
 0x163   :  { %1404 = vpow2.f32 %v1169_v3 }
 0x164   :  { %1406 = vtanh.f32 %v1020_v57 }
 0x16b   :  { %v1403_v4 = vpop.eup %1402 }
 0x16c   :  { %v1028_v5 = vadd.f32 1.0, %v1403_v4 }
 0x16d   :  { %v1405_v6 = vpop.eup %1404 }
 0x16e   :  { %1408 = vrcp.f32 %v1028_v5  ;;  %v1029_v7 = vadd.f32 1.0, %v1405_v6  ;;  %v1407_v8 = vpop.eup %1406 }
 0x16f   :  { %1410 = vtanh.f32 %v1021_v1 }
 0x170   :  { %1412 = vrcp.f32 %v1029_v7 }
 0x178   :  { %v1409_v9 = vpop.eup %1408 }
 0x179   :  { %v1411_v10 = vpop.eup %1410  ;;  %v1036_v11 = vmul.f32 %v1409_v9, %v1407_v8 }
 0x17a   :  { %v1413_v12 = vpop.eup %1412 }
 0x17b   :  { %1038 = vst [vmem:[#allocation5] sm:$0xff] %v1036_v11  ;;  %v1037_v13 = vmul.f32 %v1413_v12, %v1411_v10 }
 0x17d   :  { %1039 = vst [vmem:[#allocation5 + $0x10] sm:$0xff] %v1037_v13 }
 0x17e   :  { %1447 = shalt.err (!%p1444_p12)
}
 0x17f   :  { %s1448_s29 = scalar_lea.hbm %s1590_s5, 512 }
 0x180   :  { %p1449_p13 = scmp.ne.s32.totalorder %s1590_s5, %s1448_s29  ;;  %p1452_p0 = scmp.lt.u32.totalorder %s1448_s29, %s1590_s5 }
 0x182   :  { %p1454_p1 = pnand %p1452_p0, %p1449_p13 }
 0x184   :  { %1457 = shalt.err (!%p1454_p1)
}
 0x185   :  { %s1469_s8 = smov 256   ;;  %s1470_s9 = smov 16  }
 0x186   :  { %1053 = dma.vmem_to_hbm [thread:$0]  %s1048_s2, 512, %s1590_s5, [#allocation4], %s1469_s8, %s1469_s8, %s1470_s9  }
 0x187   :  { %1460 = dma.done.wait [#allocation4], 512  }
 0x188   :  { %1461 = vsyncadd [#allocation4], 4294966784 }
 0x189   :  { %1057 = vsyncpa [#allocation3], 1 }
 0x18a   :  { %1058 = vsyncpa [#allocation4], 1 }

</bundles_post_ra>
